<compile_context>
chip_gen: v5e
topology: v5e:2x2
jax: 0.10.0
libtpu: 0.0.40
codegen_flags: <defaults>
</compile_context>

<pallas_src>
import functools

import jax
import jax.numpy as jnp
from jax.experimental import pallas as pl
from jax.experimental.pallas import tpu as pltpu


def _kld_kernel(pred_ref, tgt_ref, out_ref, acc_ref, *, eps, n_rows):
    """Accumulate sum((t+eps) * (log(t+eps) - pred)) over the inner grid axis."""
    p = pl.program_id(0)
    j = pl.program_id(1)
    nj = pl.num_programs(1)

    @pl.when(j == 0)
    def _init():
        acc_ref[...] = jnp.zeros_like(acc_ref)

    t = tgt_ref[...].astype(jnp.float32) + jnp.float32(eps)
    val = t * (jnp.log(t) - pred_ref[...].astype(jnp.float32))

    # Mask rows outside the real array: the tail of the last (partial) block
    # and any duplicated step whose block index was clamped in the index_map.
    # (Garbage rows may produce NaN/Inf before the select; where() drops them.)
    tm = val.shape[0]
    row0 = (p * nj + j) * tm
    row_ids = row0 + jax.lax.broadcasted_iota(jnp.int32, val.shape, 0)
    val = jnp.where(row_ids < n_rows, val, 0.0)

    # Fold the (tm, W) tile into the (8, W) vector accumulator with plain
    # vreg adds (no per-step cross-lane reduce).
    if tm % 8 == 0:
        acc_ref[...] += val.reshape(tm // 8, 8, -1).sum(axis=0)
    else:  # only hit on the tiny-fallback path where tm == n_rows < 8
        acc_ref[0:tm, :] += val

    @pl.when(j == nj - 1)
    def _finalize():
        # Single cross-lane reduction per partial, done once at the end.
        out_ref[0, 0] = jnp.sum(acc_ref[...])


_LANE_WIDTHS = (2048, 1024, 512, 256, 128)


def _choose_lane_view(total_elems):
    """Largest lane-dense (rows, width) view with width a multiple of 128."""
    for w in _LANE_WIDTHS:
        if total_elems % w == 0 and total_elems // w >= 8:
            return total_elems // w, w
    return None


def _default_num_partials():
    """2 partials only where the leading grid axis can map to 2 TensorCores."""
    try:
        kind = jax.devices()[0].device_kind.lower()
    except Exception:
        return 1
    return 2 if ("v7" in kind or "7x" in kind) else 1


def _choose_row_tile(n_rows, lane_w, num_partials, itemsize_sum, *,
                     input_vmem_budget=24 * 1024 * 1024, min_steps=8):
    """Row tile: multiple of 8, <= n_rows, VMEM-budgeted, >= ~min_steps steps."""
    if n_rows < 8:
        return n_rows
    # Both inputs are double-buffered by the pipeline: 2 buffers x itemsize_sum.
    tm_budget = input_vmem_budget // max(1, 2 * lane_w * itemsize_sum)
    tm_budget = max(8, tm_budget // 8 * 8)
    rows_per_partial = -(-n_rows // num_partials)
    # Keep >= ~min_steps inner steps so DMA warmup/drain stays hidden.
    tm_steps = -(-rows_per_partial // min_steps)
    tm_steps = max(8, -(-tm_steps // 8) * 8)
    tm = min(tm_budget, tm_steps, n_rows // 8 * 8)
    return max(8, tm)


def kld_loss(y_pred, y_target, *, eps=1e-16, num_partials=None):
    """Pallas implementation of my_KLDLoss.forward.

    y_pred:   log-probabilities, shape (N, ...) — any trailing dims.
    y_target: probabilities, same shape.
    Returns float32 scalar: KLDivLoss('sum')(y_pred, y_target + eps) / N.
    """
    assert y_pred.shape == y_target.shape
    n_batch = y_pred.shape[0]
    total = 1
    for s in y_pred.shape:
        total *= int(s)

    view = _choose_lane_view(total)
    if view is None:
        # TODO(synk): totals that are tiny or not 128-divisible fall back to a
        # (batch, rest) view; correct, but lane-sparse / VMEM-heavy only for
        # pathological shapes (e.g. enormous odd trailing dims).
        rows, width = n_batch, total // n_batch
    else:
        rows, width = view

    p2 = y_pred.reshape(rows, width)   # zero-copy reshapes of contiguous arrays
    t2 = y_target.reshape(rows, width)

    if num_partials is None:
        num_partials = _default_num_partials()
    num_partials = max(1, int(num_partials))

    itemsize_sum = jnp.dtype(p2.dtype).itemsize + jnp.dtype(t2.dtype).itemsize
    tm = _choose_row_tile(rows, width, num_partials, itemsize_sum)

    nb_total = -(-rows // tm)                 # valid blocks (last may be partial)
    num_partials = min(num_partials, nb_total)
    inner_steps = -(-nb_total // num_partials)
    last_block = nb_total - 1

    if num_partials * inner_steps == nb_total:
        def in_map(p, j):
            return (p * inner_steps + j, 0)
    else:
        def in_map(p, j):
            # Clamp so a duplicated trailing step never issues a fully-OOB DMA;
            # its contribution is zeroed by the row mask inside the kernel.
            return (jnp.minimum(p * inner_steps + j, last_block), 0)

    kernel = functools.partial(_kld_kernel, eps=eps, n_rows=rows)

    partials = pl.pallas_call(
        kernel,
        out_shape=jax.ShapeDtypeStruct((num_partials, 1), jnp.float32),
        grid_spec=pltpu.PrefetchScalarGridSpec(
            num_scalar_prefetch=0,
            grid=(num_partials, inner_steps),
            in_specs=[
                pl.BlockSpec((tm, width), in_map),
                pl.BlockSpec((tm, width), in_map),
            ],
            out_specs=pl.BlockSpec(
                (1, 1), lambda p, j: (p, 0), memory_space=pltpu.SMEM
            ),
            scratch_shapes=[pltpu.VMEM((8, width), jnp.float32)],
        ),
        compiler_params=pltpu.CompilerParams(
            # Outer axis: independent partials (2 only on v7x, 1 elsewhere).
            # Inner axis: sequential reduction over row tiles.
            # TODO(synk): if xprof shows one idle TC on v7x, switch the leading
            # axis to pltpu.CORE_PARALLEL.
            dimension_semantics=("parallel", "arbitrary"),
            vmem_limit_bytes=40 * 1024 * 1024,
        ),
    )(p2, t2)

    # TODO(synk): PyTorch mutates y_target in place (y_target += 1e-16); JAX is
    # functional, so the epsilon is applied inside the kernel instead.
    return jnp.sum(partials) / jnp.float32(n_batch)


def _reference(y_pred, y_target, n_batch, eps=1e-16):
    t = y_target.astype(jnp.float32) + eps
    return jnp.sum(t * (jnp.log(t) - y_pred.astype(jnp.float32))) / n_batch


if __name__ == "__main__":
    key = jax.random.PRNGKey(0)
    k1, k2, k3, k4 = jax.random.split(key, 4)

    # Case 1: batch=8, channels=4, spatial=16x16 (lane-dense view, no tail).
    B, C, H, W = 8, 4, 16, 16
    lp = jax.random.normal(k1, (B, C, H, W), dtype=jnp.float32)
    lt = jax.random.normal(k2, (B, C, H, W), dtype=jnp.float32)
    y_pred = jax.nn.log_softmax(lp.reshape(B, -1), axis=-1).reshape(B, C, H, W)
    y_target = jax.nn.softmax(lt.reshape(B, -1), axis=-1).reshape(B, C, H, W)
    loss = jax.block_until_ready(kld_loss(y_pred, y_target))
    ref = _reference(y_pred, y_target, B)
    assert jnp.allclose(loss, ref, rtol=1e-5, atol=1e-5), (loss, ref)

    # Case 2: batch=6, channels=3, spatial=16x16 — exercises the in-kernel
    # row-mask on a partial last block (view rows not a multiple of the tile).
    B2, C2, H2, W2 = 6, 3, 16, 16
    lp2 = jax.random.normal(k3, (B2, C2, H2, W2), dtype=jnp.float32)
    lt2 = jax.random.normal(k4, (B2, C2, H2, W2), dtype=jnp.float32)
    y_pred2 = jax.nn.log_softmax(lp2.reshape(B2, -1), axis=-1).reshape(B2, C2, H2, W2)
    y_target2 = jax.nn.softmax(lt2.reshape(B2, -1), axis=-1).reshape(B2, C2, H2, W2)
    loss2 = jax.block_until_ready(kld_loss(y_pred2, y_target2))
    ref2 = _reference(y_pred2, y_target2, B2)
    assert jnp.allclose(loss2, ref2, rtol=1e-5, atol=1e-5), (loss2, ref2)

    print("KERNEL_OK")
</pallas_src>

<mosaic_0001>
module attributes {stable_mosaic.version = 11 : i64} {
  func.func @_kld_kernel(%arg0: i32, %arg1: i32, %arg2: memref<8x1024xf32, #tpu.memory_space<vmem>>, %arg3: memref<8x1024xf32, #tpu.memory_space<vmem>>, %arg4: memref<1x1xf32, #tpu.memory_space<smem>>, %arg5: memref<8x1024xf32, #tpu.memory_space<vmem>>) attributes {dimension_semantics = [#tpu.dimension_semantics<parallel>, #tpu.dimension_semantics<arbitrary>], iteration_bounds = array<i64: 1, 1>, scalar_prefetch = 0 : i64, scratch_operands = 1 : i64, tpu.core_type = #tpu.core_type<tc>, window_params = [{transform_indices = @transform_0, window_bounds = array<i64: 8, 1024>}, {transform_indices = @transform_1, window_bounds = array<i64: 8, 1024>}, {transform_indices = @transform_2, window_bounds = array<i64: 1, 1>}]} {
    %c0_i32 = arith.constant 0 : i32
    %0 = arith.cmpi eq, %arg1, %c0_i32 : i32
    %1 = arith.extui %0 : i1 to i32
    %c0_i32_0 = arith.constant 0 : i32
    %2 = arith.cmpi ne, %1, %c0_i32_0 : i32
    scf.if %2 {
      %cst_13 = arith.constant 0.000000e+00 : f32
      %28 = vector.broadcast %cst_13 : f32 to vector<8x1024xf32>
      %c0_14 = arith.constant 0 : index
      %c0_15 = arith.constant 0 : index
      %29 = vector.load %arg5[%c0_14, %c0_15] : memref<8x1024xf32, #tpu.memory_space<vmem>>, vector<8x1024xf32>
      tpu.vector_store %arg5[%c0_14, %c0_15], %28 {strides = array<i32>} : memref<8x1024xf32, #tpu.memory_space<vmem>>, vector<8x1024xf32>,
    } else {
    }
    %c0 = arith.constant 0 : index
    %c0_1 = arith.constant 0 : index
    %3 = vector.load %arg3[%c0, %c0_1] : memref<8x1024xf32, #tpu.memory_space<vmem>>, vector<8x1024xf32>
    %cst = arith.constant 1.000000e-16 : f32
    %4 = vector.broadcast %cst : f32 to vector<8x1024xf32>
    %5 = arith.addf %3, %4 : vector<8x1024xf32>
    %6 = math.log %5 : vector<8x1024xf32>
    %c0_2 = arith.constant 0 : index
    %c0_3 = arith.constant 0 : index
    %7 = vector.load %arg2[%c0_2, %c0_3] : memref<8x1024xf32, #tpu.memory_space<vmem>>, vector<8x1024xf32>
    %8 = arith.subf %6, %7 : vector<8x1024xf32>
    %9 = arith.mulf %5, %8 : vector<8x1024xf32>
    %c1_i32 = arith.constant 1 : i32
    %10 = arith.muli %arg0, %c1_i32 : i32
    %11 = arith.addi %10, %arg1 : i32
    %c8_i32 = arith.constant 8 : i32
    %12 = arith.muli %11, %c8_i32 : i32
    %13 = tpu.iota {dimensions = array<i32: 0>} : vector<8x1024xi32>
    %14 = vector.broadcast %12 : i32 to vector<8x1024xi32>
    %15 = arith.addi %14, %13 : vector<8x1024xi32>
    %c8_i32_4 = arith.constant 8 : i32
    %16 = vector.broadcast %c8_i32_4 : i32 to vector<8x1024xi32>
    %17 = arith.cmpi slt, %15, %16 : vector<8x1024xi32>
    %cst_5 = arith.constant 0.000000e+00 : f32
    %18 = vector.broadcast %cst_5 : f32 to vector<8x1024xf32>
    %19 = arith.select %17, %9, %18 : vector<8x1024xi1>, vector<8x1024xf32>
    %c0_6 = arith.constant 0 : index
    %c0_7 = arith.constant 0 : index
    %20 = vector.load %arg5[%c0_6, %c0_7] : memref<8x1024xf32, #tpu.memory_space<vmem>>, vector<8x1024xf32>
    %21 = vector.shape_cast %19 : vector<8x1024xf32> to vector<1x8x1024xf32>
    %cst_8 = arith.constant dense<0.000000e+00> : vector<8x1024xf32>
    %22 = vector.multi_reduction <add>, %21, %cst_8 [0] : vector<1x8x1024xf32> to vector<8x1024xf32>
    %23 = arith.addf %20, %22 : vector<8x1024xf32>
    %c0_9 = arith.constant 0 : index
    %c0_10 = arith.constant 0 : index
    %24 = vector.load %arg5[%c0_9, %c0_10] : memref<8x1024xf32, #tpu.memory_space<vmem>>, vector<8x1024xf32>
    tpu.vector_store %arg5[%c0_9, %c0_10], %23 {strides = array<i32>} : memref<8x1024xf32, #tpu.memory_space<vmem>>, vector<8x1024xf32>,
    %c0_i32_11 = arith.constant 0 : i32
    %25 = arith.cmpi eq, %arg1, %c0_i32_11 : i32
    %26 = arith.extui %25 : i1 to i32
    %c0_i32_12 = arith.constant 0 : i32
    %27 = arith.cmpi ne, %26, %c0_i32_12 : i32
    scf.if %27 {
      %c0_13 = arith.constant 0 : index
      %c0_14 = arith.constant 0 : index
      %28 = vector.load %arg5[%c0_13, %c0_14] : memref<8x1024xf32, #tpu.memory_space<vmem>>, vector<8x1024xf32>
      %29 = vector.shape_cast %28 : vector<8x1024xf32> to vector<1x8x1024xf32>
      %cst_15 = arith.constant dense<0.000000e+00> : vector<1xf32>
      %30 = vector.multi_reduction <add>, %29, %cst_15 [1, 2] : vector<1x8x1024xf32> to vector<1xf32>
      %31 = vector.shape_cast %30 : vector<1xf32> to vector<1x1x1xf32>
      %32 = vector.extract %31[0, 0, 0] : f32 from vector<1x1x1xf32>
      %c0_16 = arith.constant 0 : index
      %c0_17 = arith.constant 0 : index
      %33 = memref.load %arg4[%c0_16, %c0_17] : memref<1x1xf32, #tpu.memory_space<smem>>
      memref.store %32, %arg4[%c0_16, %c0_17] : memref<1x1xf32, #tpu.memory_space<smem>>
    } else {
    }
    return
  }
  func.func @transform_0(%arg0: i32, %arg1: i32) -> (i32, i32) {
    %c1_i32 = arith.constant 1 : i32
    %0 = arith.muli %arg0, %c1_i32 : i32
    %1 = arith.addi %0, %arg1 : i32
    %c0_i32 = arith.constant 0 : i32
    %c0_i32_0 = arith.constant 0 : i32
    return %1, %c0_i32 : i32, i32
  }
  func.func @transform_1(%arg0: i32, %arg1: i32) -> (i32, i32) {
    %c1_i32 = arith.constant 1 : i32
    %0 = arith.muli %arg0, %c1_i32 : i32
    %1 = arith.addi %0, %arg1 : i32
    %c0_i32 = arith.constant 0 : i32
    %c0_i32_0 = arith.constant 0 : i32
    return %1, %c0_i32 : i32, i32
  }
  func.func @transform_2(%arg0: i32, %arg1: i32) -> (i32, i32) {
    %c0_i32 = arith.constant 0 : i32
    %c0_i32_0 = arith.constant 0 : i32
    return %arg0, %c0_i32 : i32, i32
  }
}

</mosaic_0001>

<bundles_post_ra>
// kernel: tpu_custom_call.1
= control target key start
LH: loop header
LB: loop body
LE: loop exit
PB: predicated region body
PF: predicated region fallthrough
CT: control target
= control target key end

     0   :  { %7 = vsyncpa [#allocation4], 0  ;;  %s325_s0 = inlined_call_operand.hbm [shape: f32[8,1024], index: 0, kind: input, shape index: {}]   ;;  %s326_s1 = inlined_call_operand.hbm [shape: f32[8,1024], index: 1, kind: input, shape index: {}]   ;;  %s327_s2 = inlined_call_operand.hbm [shape: f32[1,1], index: 2, kind: output, shape index: {}]  }
   0x1   :  { %8 = vsyncpa [#allocation7], 0 }
   0x2   :  { %9 = vsyncpa [#allocation5], 0  ;;  %s19_s11 = sshll.u32 %s325_s0, 4  ;;  %s298_s12 = smov [#allocation3]   ;;  %s20_s11 = int_to_ptr.hbm [resolvable:$true] %s19_s11 }
   0x3   :  { %s21_s13 = sshll.u32 %s298_s12, 4  ;;  %s34_s16 = sshll.u32 %s326_s1, 4  ;;  %s22_s13 = int_to_ptr.vmem [resolvable:$true] %s21_s13  ;;  %s35_s16 = int_to_ptr.hbm [resolvable:$true] %s34_s16 }
   0x4   :  { %24 = dma.hbm_to_vmem [thread:$0]  %s20_s11, 1024, %s22_s13, [#allocation4]  }
   0x5   :  { %s299_s17 = smov [#allocation6]  }
   0x6   :  { %s36_s18 = sshll.u32 %s299_s17, 4  ;;  %s37_s18 = int_to_ptr.vmem [resolvable:$true] %s36_s18 }
   0x7   :  { %39 = dma.hbm_to_vmem [thread:$0]  %s35_s16, 1024, %s37_s18, [#allocation7]  }
   0x8   :  { %292 = dma.done.wait [#allocation4], 1024  }
   0x9   :  { %293 = vsyncadd [#allocation4], 4294966272 }
   0xa   :  { %294 = dma.done.wait [#allocation7], 1024  }
   0xb   :  { %295 = vsyncadd [#allocation7], 4294966272  ;;  %v62_v0 = vld [vmem:[#allocation6] sm:$0xff]  ;;  %v63_v1 = vld [vmem:[#allocation6 + $0x8] sm:$0xff]  ;;  %s199_s19 = sshll.u32 %s327_s2, 4  ;;  %s300_s21 = smov [#allocation8]   ;;  %s200_s19 = int_to_ptr.hbm [resolvable:$true] %s199_s19 }
   0xc   :  { %v64_v2 = vld [vmem:[#allocation6 + $0x10] sm:$0xff]  ;;  %v65_v3 = vld [vmem:[#allocation6 + $0x18] sm:$0xff]  ;;  %v66_v4 = vld [vmem:[#allocation6 + $0x20] sm:$0xff]  ;;  %v70_v6 = vadd.f32 1e-16, %v62_v0 }
   0xd   :  { %v67_v5 = vld [vmem:[#allocation6 + $0x28] sm:$0xff]  ;;  %v68_v7 = vld [vmem:[#allocation6 + $0x30] sm:$0xff]  ;;  %v71_v8 = vadd.f32 1e-16, %v63_v1  ;;  %v72_v9 = vadd.f32 1e-16, %v64_v2 }
   0xe   :  { %v69_v10 = vld [vmem:[#allocation6 + $0x38] sm:$0xff]  ;;  %v73_v11 = vadd.f32 1e-16, %v65_v3  ;;  %v74_v12 = vadd.f32 1e-16, %v66_v4  ;;  %216 = vlog2.f32 %v70_v6  ;;  %v94_v17 = vld [vmem:[#allocation3] sm:$0xff] }
   0xf   :  { %v75_v13 = vadd.f32 1e-16, %v67_v5  ;;  %218 = vlog2.f32 %v71_v8  ;;  %v76_v14 = vadd.f32 1e-16, %v68_v7  ;;  %v77_v15 = vadd.f32 1e-16, %v69_v10 }
  0x10   :  { %220 = vlog2.f32 %v72_v9  ;;  %v95_v20 = vld [vmem:[#allocation3 + $0x8] sm:$0xff]  ;;  %v96_v23 = vld [vmem:[#allocation3 + $0x10] sm:$0xff]  ;;  %v97_v26 = vld [vmem:[#allocation3 + $0x18] sm:$0xff] }
  0x11   :  { %222 = vlog2.f32 %v73_v11  ;;  %v98_v30 = vld [vmem:[#allocation3 + $0x20] sm:$0xff]  ;;  %v99_v34 = vld [vmem:[#allocation3 + $0x28] sm:$0xff]  ;;  %v100_v43 = vld [vmem:[#allocation3 + $0x30] sm:$0xff] }
  0x12   :  { %224 = vlog2.f32 %v74_v12  ;;  %v101_v50 = vld [vmem:[#allocation3 + $0x38] sm:$0xff] }
  0x13   :  { %226 = vlog2.f32 %v75_v13 }
  0x14   :  { %v217_v16 = vpop.eup %216  ;;  %228 = vlog2.f32 %v76_v14 }
  0x15   :  { %v219_v18 = vpop.eup %218  ;;  %v79_v19 = vmul.f32 0.6931472, %v217_v16  ;;  %230 = vlog2.f32 %v77_v15 }
  0x16   :  { %v221_v21 = vpop.eup %220  ;;  %v81_v22 = vmul.f32 0.6931472, %v219_v18 }
  0x17   :  { %v223_v24 = vpop.eup %222  ;;  %v83_v25 = vmul.f32 0.6931472, %v221_v21  ;;  %v102_v27 = vsub.f32 %v79_v19, %v94_v17 }
  0x18   :  { %v225_v28 = vpop.eup %224  ;;  %v85_v29 = vmul.f32 0.6931472, %v223_v24  ;;  %v103_v31 = vsub.f32 %v81_v22, %v95_v20 }
  0x19   :  { %v227_v32 = vpop.eup %226  ;;  %v87_v33 = vmul.f32 0.6931472, %v225_v28  ;;  %v104_v35 = vsub.f32 %v83_v25, %v96_v23  ;;  %v110_v36 = vmul.f32 %v102_v27, %v70_v6 }
  0x1a   :  { %v229_v37 = vpop.eup %228  ;;  %v89_v38 = vmul.f32 0.6931472, %v227_v32  ;;  %v105_v39 = vsub.f32 %v85_v29, %v97_v26  ;;  %v111_v40 = vmul.f32 %v103_v31, %v71_v8 }
  0x1b   :  { %v231_v41 = vpop.eup %230  ;;  %v91_v42 = vmul.f32 0.6931472, %v229_v37  ;;  %v106_v44 = vsub.f32 %v87_v33, %v98_v30  ;;  %v112_v45 = vmul.f32 %v104_v35, %v72_v9 }
  0x1c   :  { %v93_v46 = vmul.f32 0.6931472, %v231_v41  ;;  %v107_v47 = vsub.f32 %v89_v38, %v99_v34  ;;  %v113_v48 = vmul.f32 %v105_v39, %v73_v11  ;;  %v176_v49 = vadd.f32 %v111_v40, %v110_v36 }
  0x1d   :  { %v108_v51 = vsub.f32 %v91_v42, %v100_v43  ;;  %v114_v52 = vmul.f32 %v106_v44, %v74_v12 }
  0x1e   :  { %v177_v53 = vadd.f32 %v176_v49, %v112_v45  ;;  %v109_v54 = vsub.f32 %v93_v46, %v101_v50  ;;  %v115_v55 = vmul.f32 %v107_v47, %v75_v13 }
  0x1f   :  { %v116_v57 = vmul.f32 %v108_v51, %v76_v14 }
  0x20   :  { %v178_v56 = vadd.f32 %v177_v53, %v113_v48  ;;  %v117_v59 = vmul.f32 %v109_v54, %v77_v15 }
  0x22   :  { %v179_v58 = vadd.f32 %v178_v56, %v114_v52 }
  0x24   :  { %v180_v60 = vadd.f32 %v179_v58, %v115_v55 }
  0x26   :  { %v181_v61 = vadd.f32 %v180_v60, %v116_v57 }
  0x28   :  { %v182_v62 = vadd.f32 %v181_v61, %v117_v59 }
  0x2a   :  { %183 = vadd.xlane.f32.xlu0 %v182_v62 }
  0x9d   :  { %v184_v63 = vpop.xlane.xlu0 %183 }
  0x9e   :  { %v185_v0 = vrot.slane %v184_v63, 4 }
  0xa0   :  { %v186_v1 = vadd.f32 %v185_v0, %v184_v63 }
  0xa2   :  { %v187_v2 = vrot.slane %v186_v1, 2 }
  0xa4   :  { %v188_v3 = vadd.f32 %v187_v2, %v186_v1 }
  0xa6   :  { %v189_v4 = vrot.slane %v188_v3, 1 }
  0xa8   :  { %v190_v5 = vadd.f32 %v189_v4, %v188_v3 }
  0xaa   :  { %211 = vpush %v190_v5 }
  0xdb   :  { %s212_s20 = spop %211 }
  0xdc   :  { %193 = sst [smem:[#allocation8]] %s212_s20 }
  0xdd   :  { %202 = dma.smem_to_hbm %s300_s21, 16, %s200_s19, [#allocation5]  }
  0xde   :  { %296 = dma.done.wait [#allocation5], 16  }
  0xdf   :  { %297 = vsyncadd [#allocation5], 4294967280 }
  0xe0   :  { %207 = sfence }
  0xe1   :  { %208 = vsyncpa [#allocation4], 1 }
  0xe2   :  { %209 = vsyncpa [#allocation7], 1 }
  0xe3   :  { %210 = vsyncpa [#allocation5], 1 }

</bundles_post_ra>
